<compile_context>
chip_gen: v6e
topology: v6e:2x2x1
jax: 0.10.0
libtpu: 0.0.40
codegen_flags: <defaults>
</compile_context>

<pallas_src>
import functools

import jax
import jax.numpy as jnp
from jax.experimental import pallas as pl
from jax.experimental.pallas import tpu as pltpu


def _conv1x1_kernel(x_ref, w_ref, b_ref, o_ref):
    # x_ref: (1, C_in, tn)   w_ref: (C_out, C_in)   b_ref: (C_out, 1)
    # o_ref: (1, C_out, tn)
    x = x_ref[0, :, :].astype(jnp.float32)        # (C_in, tn)
    w = w_ref[...].astype(jnp.float32)            # (C_out, C_in)
    c_in = w.shape[1]

    # Tiny-K contraction on the VPU: acc[c, n] = sum_k w[c, k] * x[k, n]
    acc = w[:, 0:1] * x[0:1, :]                   # (C_out, 1)*(1, tn) -> (C_out, tn)
    for k in range(1, c_in):                      # static unroll (C_in is tiny)
        acc = acc + w[:, k:k + 1] * x[k:k + 1, :]
    acc = acc + b_ref[...]                        # bias (C_out, 1) broadcast over lanes

    o_ref[0, :, :] = acc.astype(o_ref.dtype)


@functools.partial(jax.jit, static_argnames=("tn_max",))
def coord_transform(x, weight, bias, *, tn_max=2048):
    """1x1 conv, PyTorch NCHW semantics.

    x:      (B, C_in, H, W) float32
    weight: (C_out, C_in, 1, 1)
    bias:   (C_out,)
    returns (B, C_out, H, W)
    """
    B, C_in, H, W = x.shape
    C_out = weight.shape[0]
    HW = H * W

    # Free views (no data movement).
    x3 = x.reshape(B, C_in, HW)                   # (B, C_in, HW)
    w_mat = weight.reshape(C_out, C_in)           # (C_out, C_in)
    b_mat = bias.reshape(C_out, 1)                # (C_out, 1)

    # Spatial tile: biggest multiple of 128 up to tn_max (or full HW if HW is
    # not 128-aligned, which satisfies the "equals full dim" layout rule).
    if HW % 128 == 0:
        tn = max(128, (min(tn_max, HW) // 128) * 128)
    else:
        tn = HW

    grid = (B, pl.cdiv(HW, tn))

    bytes_accessed = (
        B * C_in * HW * 4 + C_out * C_in * 4 + C_out * 4 + B * C_out * HW * 4
    )
    cost = pl.CostEstimate(
        flops=2 * B * HW * C_in * C_out,
        transcendentals=0,
        bytes_accessed=bytes_accessed,
    )

    out3 = pl.pallas_call(
        _conv1x1_kernel,
        out_shape=jax.ShapeDtypeStruct((B, C_out, HW), x.dtype),
        grid_spec=pltpu.PrefetchScalarGridSpec(
            num_scalar_prefetch=0,
            grid=grid,
            in_specs=[
                pl.BlockSpec((1, C_in, tn), lambda b, j: (b, 0, j)),   # X tile
                pl.BlockSpec((C_out, C_in), lambda b, j: (0, 0)),      # W resident
                pl.BlockSpec((C_out, 1), lambda b, j: (0, 0)),         # bias resident
            ],
            out_specs=pl.BlockSpec((1, C_out, tn), lambda b, j: (b, 0, j)),
        ),
        compiler_params=pltpu.CompilerParams(
            dimension_semantics=("parallel", "parallel"),
        ),
        cost_estimate=cost,
    )(x3, w_mat, b_mat)

    # Free reshape back to NCHW.
    return out3.reshape(B, C_out, H, W)


if __name__ == "__main__":
    key = jax.random.PRNGKey(0)
    k_x, k_w, k_b = jax.random.split(key, 3)

    B, C_in, H, W = 2, 2, 16, 16   # input_dim=2 per module default
    C_out = 128                    # output_dim=128 per module default

    x = jax.random.normal(k_x, (B, C_in, H, W), dtype=jnp.float32)
    # Deterministic synthetic parameters (shapes match nn.Conv2d(2, 128, 1)).
    weight = jax.random.normal(k_w, (C_out, C_in, 1, 1), dtype=jnp.float32) * 0.1
    bias = jax.random.normal(k_b, (C_out,), dtype=jnp.float32) * 0.1

    out = coord_transform(x, weight, bias)
    out = jax.block_until_ready(out)

    # Reference check (plain JAX einsum == 1x1 conv).
    ref = (
        jnp.einsum("bchw,oc->bohw", x, weight.reshape(C_out, C_in))
        + bias[None, :, None, None]
    )
    assert out.shape == (B, C_out, H, W), out.shape
    assert jnp.allclose(out, ref, atol=1e-5, rtol=1e-5), float(
        jnp.max(jnp.abs(out - ref))
    )

    print("KERNEL_OK")
</pallas_src>

<mosaic_0001>
module attributes {stable_mosaic.version = 11 : i64} {
  func.func @_conv1x1_kernel(%arg0: i32, %arg1: i32, %arg2: memref<1x2x256xf32, #tpu.memory_space<vmem>>, %arg3: memref<128x2xf32, #tpu.memory_space<vmem>>, %arg4: memref<128x1xf32, #tpu.memory_space<vmem>>, %arg5: memref<1x128x256xf32, #tpu.memory_space<vmem>>) attributes {dimension_semantics = [#tpu.dimension_semantics<parallel>, #tpu.dimension_semantics<parallel>], iteration_bounds = array<i64: 2, 1>, scalar_prefetch = 0 : i64, scratch_operands = 0 : i64, tpu.core_type = #tpu.core_type<tc>, window_params = [{transform_indices = @transform_0, window_bounds = array<i64: 1, 2, 256>}, {pipeline_mode = #tpu.pipeline_mode<synchronous>, transform_indices = @transform_1, window_bounds = array<i64: 128, 2>}, {pipeline_mode = #tpu.pipeline_mode<synchronous>, transform_indices = @transform_2, window_bounds = array<i64: 128, 1>}, {transform_indices = @transform_3, window_bounds = array<i64: 1, 128, 256>}]} {
    %c0 = arith.constant 0 : index
    %c0_0 = arith.constant 0 : index
    %c0_1 = arith.constant 0 : index
    %0 = vector.load %arg2[%c0, %c0_0, %c0_1] : memref<1x2x256xf32, #tpu.memory_space<vmem>>, vector<1x2x256xf32>
    %1 = vector.shape_cast %0 : vector<1x2x256xf32> to vector<2x256xf32>
    %c0_2 = arith.constant 0 : index
    %c0_3 = arith.constant 0 : index
    %2 = vector.load %arg3[%c0_2, %c0_3] : memref<128x2xf32, #tpu.memory_space<vmem>>, vector<128x2xf32>
    %3 = vector.extract_strided_slice %2 {offsets = [0, 0], sizes = [128, 1], strides = [1, 1]} : vector<128x2xf32> to vector<128x1xf32>
    %4 = vector.extract_strided_slice %1 {offsets = [0, 0], sizes = [1, 256], strides = [1, 1]} : vector<2x256xf32> to vector<1x256xf32>
    %5 = vector.broadcast %3 : vector<128x1xf32> to vector<128x256xf32>
    %6 = vector.broadcast %4 : vector<1x256xf32> to vector<128x256xf32>
    %7 = arith.mulf %5, %6 : vector<128x256xf32>
    %8 = vector.extract_strided_slice %2 {offsets = [0, 1], sizes = [128, 1], strides = [1, 1]} : vector<128x2xf32> to vector<128x1xf32>
    %9 = vector.extract_strided_slice %1 {offsets = [1, 0], sizes = [1, 256], strides = [1, 1]} : vector<2x256xf32> to vector<1x256xf32>
    %10 = vector.broadcast %8 : vector<128x1xf32> to vector<128x256xf32>
    %11 = vector.broadcast %9 : vector<1x256xf32> to vector<128x256xf32>
    %12 = arith.mulf %10, %11 : vector<128x256xf32>
    %13 = arith.addf %7, %12 : vector<128x256xf32>
    %c0_4 = arith.constant 0 : index
    %c0_5 = arith.constant 0 : index
    %14 = vector.load %arg4[%c0_4, %c0_5] : memref<128x1xf32, #tpu.memory_space<vmem>>, vector<128x1xf32>
    %15 = vector.broadcast %14 : vector<128x1xf32> to vector<128x256xf32>
    %16 = arith.addf %13, %15 : vector<128x256xf32>
    %c0_6 = arith.constant 0 : index
    %c0_7 = arith.constant 0 : index
    %c0_8 = arith.constant 0 : index
    %17 = vector.load %arg5[%c0_6, %c0_7, %c0_8] : memref<1x128x256xf32, #tpu.memory_space<vmem>>, vector<1x128x256xf32>
    %18 = vector.shape_cast %17 : vector<1x128x256xf32> to vector<128x256xf32>
    %19 = vector.shape_cast %16 : vector<128x256xf32> to vector<1x128x256xf32>
    tpu.vector_store %arg5[%c0_6, %c0_7, %c0_8], %19 {strides = array<i32>} : memref<1x128x256xf32, #tpu.memory_space<vmem>>, vector<1x128x256xf32>,
    return
  }
  func.func @transform_0(%arg0: i32, %arg1: i32) -> (i32, i32, i32) {
    %c0_i32 = arith.constant 0 : i32
    %c0_i32_0 = arith.constant 0 : i32
    return %arg0, %c0_i32, %arg1 : i32, i32, i32
  }
  func.func @transform_1(%arg0: i32, %arg1: i32) -> (i32, i32) {
    %c0_i32 = arith.constant 0 : i32
    %c0_i32_0 = arith.constant 0 : i32
    %c0_i32_1 = arith.constant 0 : i32
    return %c0_i32, %c0_i32_0 : i32, i32
  }
  func.func @transform_2(%arg0: i32, %arg1: i32) -> (i32, i32) {
    %c0_i32 = arith.constant 0 : i32
    %c0_i32_0 = arith.constant 0 : i32
    %c0_i32_1 = arith.constant 0 : i32
    return %c0_i32, %c0_i32_0 : i32, i32
  }
  func.func @transform_3(%arg0: i32, %arg1: i32) -> (i32, i32, i32) {
    %c0_i32 = arith.constant 0 : i32
    %c0_i32_0 = arith.constant 0 : i32
    return %arg0, %c0_i32, %arg1 : i32, i32, i32
  }
}

</mosaic_0001>

<bundles_post_ra>
// kernel: coord_transform.1
= control target key start
LH: loop header
LB: loop body
LE: loop exit
PB: predicated region body
PF: predicated region fallthrough
CT: control target
= control target key end

     0   :  { %s841_s12 = smov 0   ;;  %s843_s13 = smov 0   ;;  %s1158_s0 = inlined_call_operand.vmem [shape: f32[2,2,256], index: 0, kind: input, shape index: {}]   ;;  %s1159_s1 = inlined_call_operand.vmem [shape: f32[128,2], index: 1, kind: input, shape index: {}]   ;;  %s1160_s2 = inlined_call_operand.vmem [shape: f32[128,1], index: 2, kind: input, shape index: {}]   ;;  %s1161_s3 = inlined_call_operand.vmem [shape: f32[2,128,256], index: 3, kind: output, shape index: {}]  }
   0x1   :  { %s845_s14 = smov 0  }
   0x2 LB: > { %s25_s15 = sadd.s32 1, %s813_s13  ;;  %p755_p0 = scmp.ge.s32.totalorder %s817_s14, 1  ;;  %s817_s14 = sphi %s845_s14, %s13_s14   ;;  %s813_s13 = sphi %s843_s13, %s1163_s13   ;;  %s809_s12 = sphi %s841_s12, %s1162_s12  }
   0x3   : > { %p27_p1 = scmp.ge.s32.totalorder %s25_s15, 2  ;;  %p158_p2 = scmp.lt.s32.totalorder %s817_s14, 3 }
   0x5   : > { %s1165_s15 = smov (%p27_p1, %s25_s15), 0  ;;  %p159_p3 = pnand %p755_p0, %p158_p2 }
   0x6   : > { %p191_p4 = scmp.lt.s32.totalorder (!%p159_p3), %s809_s12, 1 }
   0x7   : > { %162 = sbr.rel (%p159_p3) target bundleno = 239 (0xef), region = 32 }
   0xc   : > { %v213_v0 = vld [vmem:[%s1159_s1 + $0x10] sm:$0xff]  ;;  %v211_v1 = vld [vmem:[%s1159_s1] sm:$0xff]  ;;  %v819_v2 = vmov 1   ;;  %v820_v3 = vmov 0   ;;  %v214_v4 = vld [vmem:[%s1159_s1 + $0x18] sm:$0xff]  ;;  %s1167_s12 = smov (!%p191_p4, %s809_s12), 1  ;;  %v308_v34 = vlaneseq }
   0xd   : > { %791 = vset.pattern.permute.xlu0 %v819_v2  ;;  %790 = vset.pattern.permute.xlu1 %v820_v3  ;;  %v216_v5 = vld [vmem:[%s1159_s1 + $0x28] sm:$0xff]  ;;  %v218_v6 = vld [vmem:[%s1159_s1 + $0x38] sm:$0xff]  ;;  %v215_v12 = vld [vmem:[%s1159_s1 + $0x20] sm:$0xff]  ;;  %s762_s7 = sshll.u32 %s1167_s12, 2  ;;  %s763_s11 = sshll.u32 %s1167_s12, 8 }
   0xe   : > { %239 = vperm.xlu1 %790, %v213_v0   ;;  %359 = vperm.xlu0 %791, %v211_v1   ;;  %v220_v7 = vld [vmem:[%s1159_s1 + $0x48] sm:$0xff]  ;;  %v222_v8 = vld [vmem:[%s1159_s1 + $0x58] sm:$0xff]  ;;  %v217_v13 = vld [vmem:[%s1159_s1 + $0x30] sm:$0xff]  ;;  %v309_v35 = vshrl.u32 %v308_v34, 7  ;;  %s198_s10 = scalar_lea.vmem %s1158_s0, %s762_s7  ;;  %s1065_s18 = scalar_lea.vmem %s1161_s3, %s763_s11 }
   0xf   : > { %v224_v9 = vld [vmem:[%s1159_s1 + $0x68] sm:$0xff]  ;;  %v226_v10 = vld [vmem:[%s1159_s1 + $0x78] sm:$0xff]  ;;  %v219_v14 = vld [vmem:[%s1159_s1 + $0x40] sm:$0xff] }
  0x10   : > { %v212_v11 = vld [vmem:[%s1159_s1 + $0x8] sm:$0xff]  ;;  %v221_v15 = vld [vmem:[%s1159_s1 + $0x50] sm:$0xff]  ;;  %v223_v16 = vld [vmem:[%s1159_s1 + $0x60] sm:$0xff]  ;;  %v424_v36 = vsub.s32 1, %v309_v35  ;;  %v428_v37 = vsub.s32 3, %v309_v35  ;;  %v310_v38 = vsub.s32 0, %v309_v35 }
  0x11   : > { %v225_v17 = vld [vmem:[%s1159_s1 + $0x70] sm:$0xff]  ;;  %v505_v18 = vld [vmem:[%s1160_s2 + $0x8] sm:$0xff]  ;;  %v504_v19 = vld [vmem:[%s1160_s2] sm:$0xff]  ;;  %v314_v39 = vsub.s32 2, %v309_v35 }
  0x12   : > { %244 = vperm.xlu1 %790, %v214_v4   ;;  %371 = vperm.xlu0 %791, %v214_v4   ;;  %v508_v20 = vld [vmem:[%s1160_s2 + $0x20] sm:$0xff]  ;;  %v506_v21 = vld [vmem:[%s1160_s2 + $0x10] sm:$0xff]  ;;  %v507_v23 = vld [vmem:[%s1160_s2 + $0x18] sm:$0xff] }
  0x13   : > { %v510_v22 = vld [vmem:[%s1160_s2 + $0x30] sm:$0xff]  ;;  %v512_v24 = vld [vmem:[%s1160_s2 + $0x40] sm:$0xff]  ;;  %v509_v25 = vld [vmem:[%s1160_s2 + $0x28] sm:$0xff] }
  0x14   : > { %v514_v26 = vld [vmem:[%s1160_s2 + $0x50] sm:$0xff]  ;;  %v511_v27 = vld [vmem:[%s1160_s2 + $0x38] sm:$0xff]  ;;  %v516_v28 = vld [vmem:[%s1160_s2 + $0x60] sm:$0xff] }
  0x15   : > { %v513_v29 = vld [vmem:[%s1160_s2 + $0x48] sm:$0xff]  ;;  %v518_v30 = vld [vmem:[%s1160_s2 + $0x70] sm:$0xff]  ;;  %v515_v31 = vld [vmem:[%s1160_s2 + $0x58] sm:$0xff] }
  0x16   : > { %254 = vperm.xlu1 %790, %v216_v5   ;;  %379 = vperm.xlu0 %791, %v216_v5   ;;  %v517_v32 = vld [vmem:[%s1160_s2 + $0x68] sm:$0xff]  ;;  %v519_v33 = vld [vmem:[%s1160_s2 + $0x78] sm:$0xff]  ;;  %v210_v40 = vld [vmem:[%s198_s10] sm:$0xf] }
  0x17   : > { %v425_v41 = vrot.slane %v210_v40, %v424_v36  ;;  %v429_v42 = vrot.slane %v210_v40, %v428_v37  ;;  %v311_v43 = vrot.slane %v210_v40, %v310_v38  ;;  %v315_v44 = vrot.slane %v210_v40, %v314_v39 }
  0x19   : > { %v969_v47 = vrot.slane %v425_v41, %v424_v36  ;;  %v971_v48 = vrot.slane %v429_v42, %v424_v36  ;;  %v973_v49 = vrot.slane %v311_v43, %v310_v38  ;;  %v975_v50 = vrot.slane %v315_v44, %v310_v38 }
  0x1a   : > { %264 = vperm.xlu1 %790, %v218_v6   ;;  %387 = vperm.xlu0 %791, %v218_v6  }
  0x1e   : > { %274 = vperm.xlu1 %790, %v220_v7   ;;  %395 = vperm.xlu0 %791, %v220_v7  }
  0x22   : > { %284 = vperm.xlu1 %790, %v222_v8   ;;  %403 = vperm.xlu0 %791, %v222_v8  }
  0x26   : > { %294 = vperm.xlu1 %790, %v224_v9   ;;  %411 = vperm.xlu0 %791, %v224_v9  }
  0x2a   : > { %304 = vperm.xlu1 %790, %v226_v10   ;;  %419 = vperm.xlu0 %791, %v226_v10  }
  0x2e   : > { %792 = vset.pattern.permute.xlu1 %v819_v2  ;;  %793 = vset.pattern.permute.xlu0 %v820_v3 }
  0x2f   : > { %363 = vperm.xlu1 %792, %v212_v11   ;;  %229 = vperm.xlu0 %793, %v211_v1  }
  0x33   : > { %367 = vperm.xlu1 %792, %v213_v0   ;;  %234 = vperm.xlu0 %793, %v212_v11  }
  0x37   : > { %375 = vperm.xlu1 %792, %v215_v12   ;;  %249 = vperm.xlu0 %793, %v215_v12  }
  0x3b   : > { %383 = vperm.xlu1 %792, %v217_v13   ;;  %259 = vperm.xlu0 %793, %v217_v13  }
  0x3f   : > { %391 = vperm.xlu1 %792, %v219_v14   ;;  %269 = vperm.xlu0 %793, %v219_v14  }
  0x43   : > { %399 = vperm.xlu1 %792, %v221_v15   ;;  %279 = vperm.xlu0 %793, %v221_v15  }
  0x47   : > { %407 = vperm.xlu1 %792, %v223_v16   ;;  %289 = vperm.xlu0 %793, %v223_v16  }
  0x4b   : > { %415 = vperm.xlu1 %792, %v225_v17   ;;  %299 = vperm.xlu0 %793, %v225_v17  }
  0x4f   : > { %794 = vset.pattern.permute.xlu1 %v820_v3  ;;  %527 = vperm.xlu0 %793, %v505_v18  }
  0x50   : > { %522 = vperm.xlu1 %794, %v504_v19  }
  0x53   : > { %542 = vperm.xlu0 %793, %v508_v20  }
  0x54   : > { %532 = vperm.xlu1 %794, %v506_v21  }
  0x57   : > { %552 = vperm.xlu0 %793, %v510_v22  }
  0x58   : > { %537 = vperm.xlu1 %794, %v507_v23  }
  0x5b   : > { %562 = vperm.xlu0 %793, %v512_v24  }
  0x5c   : > { %547 = vperm.xlu1 %794, %v509_v25  }
  0x5f   : > { %572 = vperm.xlu0 %793, %v514_v26  }
  0x60   : > { %557 = vperm.xlu1 %794, %v511_v27  }
  0x63   : > { %582 = vperm.xlu0 %793, %v516_v28  }
  0x64   : > { %567 = vperm.xlu1 %794, %v513_v29  }
  0x67   : > { %592 = vperm.xlu0 %793, %v518_v30  }
  0x68   : > { %577 = vperm.xlu1 %794, %v515_v31  }
  0x6c   : > { %587 = vperm.xlu1 %794, %v517_v32  }
  0x70   : > { %597 = vperm.xlu1 %794, %v519_v33  }
  0x89   : > { %v965_v45 = vpop.permute.xlu1 %239  ;;  %v967_v46 = vpop.permute.xlu0 %359 }
  0x8d   : > { %v245_v51 = vpop.permute.xlu1 %244  ;;  %v372_v52 = vpop.permute.xlu0 %371 }
  0x8e   : > { %v332_v53 = vmul.f32 %v973_v49, %v245_v51  ;;  %v333_v54 = vmul.f32 %v975_v50, %v245_v51  ;;  %v446_v55 = vmul.f32 %v969_v47, %v372_v52  ;;  %v447_v56 = vmul.f32 %v971_v48, %v372_v52 }
  0x90   : > { %v981_v57 = vadd.f32 %v446_v55, %v332_v53  ;;  %v983_v58 = vadd.f32 %v447_v56, %v333_v54 }
  0x91   : > { %v255_v59 = vpop.permute.xlu1 %254  ;;  %v380_v60 = vpop.permute.xlu0 %379 }
  0x92   : > { %v336_v61 = vmul.f32 %v973_v49, %v255_v59  ;;  %v337_v62 = vmul.f32 %v975_v50, %v255_v59  ;;  %v450_v63 = vmul.f32 %v969_v47, %v380_v60  ;;  %v451_v0 = vmul.f32 %v971_v48, %v380_v60 }
  0x94   : > { %v989_v1 = vadd.f32 %v450_v63, %v336_v61  ;;  %v991_v2 = vadd.f32 %v451_v0, %v337_v62 }
  0x95   : > { %v265_v3 = vpop.permute.xlu1 %264  ;;  %v388_v4 = vpop.permute.xlu0 %387 }
  0x96   : > { %v340_v5 = vmul.f32 %v973_v49, %v265_v3  ;;  %v341_v6 = vmul.f32 %v975_v50, %v265_v3  ;;  %v454_v7 = vmul.f32 %v969_v47, %v388_v4  ;;  %v455_v8 = vmul.f32 %v971_v48, %v388_v4 }
  0x98   : > { %v997_v9 = vadd.f32 %v454_v7, %v340_v5  ;;  %v999_v10 = vadd.f32 %v455_v8, %v341_v6 }
  0x99   : > { %v275_v11 = vpop.permute.xlu1 %274  ;;  %v396_v12 = vpop.permute.xlu0 %395 }
  0x9a   : > { %v344_v13 = vmul.f32 %v973_v49, %v275_v11  ;;  %v345_v14 = vmul.f32 %v975_v50, %v275_v11  ;;  %v458_v15 = vmul.f32 %v969_v47, %v396_v12  ;;  %v459_v16 = vmul.f32 %v971_v48, %v396_v12 }
  0x9b   : > { %v440_v11 = vmul.f32 %v969_v47, %v967_v46  ;;  %v441_v12 = vmul.f32 %v971_v48, %v967_v46 }
  0x9c   : > { %v1005_v17 = vadd.f32 %v458_v15, %v344_v13  ;;  %v1007_v18 = vadd.f32 %v459_v16, %v345_v14 }
  0x9d   : > { %v285_v19 = vpop.permute.xlu1 %284  ;;  %v404_v20 = vpop.permute.xlu0 %403 }
  0x9e   : > { %v348_v21 = vmul.f32 %v973_v49, %v285_v19  ;;  %v349_v22 = vmul.f32 %v975_v50, %v285_v19  ;;  %v462_v23 = vmul.f32 %v969_v47, %v404_v20  ;;  %v463_v24 = vmul.f32 %v971_v48, %v404_v20 }
  0xa0   : > { %v1013_v25 = vadd.f32 %v462_v23, %v348_v21  ;;  %v1015_v26 = vadd.f32 %v463_v24, %v349_v22 }
  0xa1   : > { %v295_v27 = vpop.permute.xlu1 %294  ;;  %v412_v28 = vpop.permute.xlu0 %411 }
  0xa2   : > { %v352_v29 = vmul.f32 %v973_v49, %v295_v27  ;;  %v353_v30 = vmul.f32 %v975_v50, %v295_v27  ;;  %v466_v31 = vmul.f32 %v969_v47, %v412_v28  ;;  %v467_v32 = vmul.f32 %v971_v48, %v412_v28 }
  0xa4   : > { %v1021_v33 = vadd.f32 %v466_v31, %v352_v29  ;;  %v1023_v34 = vadd.f32 %v467_v32, %v353_v30  ;;  %v330_v29 = vmul.f32 %v973_v49, %v965_v45  ;;  %v331_v30 = vmul.f32 %v975_v50, %v965_v45 }
  0xa5   : > { %v305_v35 = vpop.permute.xlu1 %304  ;;  %v420_v36 = vpop.permute.xlu0 %419 }
  0xa6   : > { %v356_v37 = vmul.f32 %v973_v49, %v305_v35  ;;  %v357_v38 = vmul.f32 %v975_v50, %v305_v35  ;;  %v470_v39 = vmul.f32 %v969_v47, %v420_v36  ;;  %v471_v40 = vmul.f32 %v971_v48, %v420_v36 }
  0xa8   : > { %v1029_v41 = vadd.f32 %v470_v39, %v356_v37  ;;  %v1031_v42 = vadd.f32 %v471_v40, %v357_v38 }
  0xaa   : > { %v364_v43 = vpop.permute.xlu1 %363  ;;  %v230_v44 = vpop.permute.xlu0 %229 }
  0xab   : > { %v326_v5 = vmul.f32 %v973_v49, %v230_v44  ;;  %v327_v6 = vmul.f32 %v975_v50, %v230_v44  ;;  %v442_v13 = vmul.f32 %v969_v47, %v364_v43  ;;  %v443_v14 = vmul.f32 %v971_v48, %v364_v43 }
  0xad   : > { %v472_v27 = vadd.f32 %v440_v11, %v326_v5  ;;  %v473_v28 = vadd.f32 %v441_v12, %v327_v6 }
  0xae   : > { %v368_v51 = vpop.permute.xlu1 %367  ;;  %v235_v52 = vpop.permute.xlu0 %234 }
  0xaf   : > { %v328_v3 = vmul.f32 %v973_v49, %v235_v52  ;;  %v329_v4 = vmul.f32 %v975_v50, %v235_v52  ;;  %v444_v23 = vmul.f32 %v969_v47, %v368_v51  ;;  %v445_v24 = vmul.f32 %v971_v48, %v368_v51 }
  0xb1   : > { %v474_v21 = vadd.f32 %v442_v13, %v328_v3  ;;  %v475_v22 = vadd.f32 %v443_v14, %v329_v4  ;;  %v476_v52 = vadd.f32 %v444_v23, %v330_v29 }
  0xb2   : > { %v376_v53 = vpop.permute.xlu1 %375  ;;  %v250_v54 = vpop.permute.xlu0 %249 }
  0xb3   : > { %v448_v15 = vmul.f32 %v969_v47, %v376_v53  ;;  %v449_v16 = vmul.f32 %v971_v48, %v376_v53  ;;  %v334_v19 = vmul.f32 %v973_v49, %v250_v54  ;;  %v335_v20 = vmul.f32 %v975_v50, %v250_v54 }
  0xb4   : > { %v477_v53 = vadd.f32 %v445_v24, %v331_v30 }
  0xb5   : > { %v480_v38 = vadd.f32 %v448_v15, %v334_v19  ;;  %v481_v39 = vadd.f32 %v449_v16, %v335_v20 }
  0xb6   : > { %v384_v55 = vpop.permute.xlu1 %383  ;;  %v260_v56 = vpop.permute.xlu0 %259 }
  0xb7   : > { %v452_v40 = vmul.f32 %v969_v47, %v384_v55  ;;  %v453_v43 = vmul.f32 %v971_v48, %v384_v55  ;;  %v338_v44 = vmul.f32 %v973_v49, %v260_v56  ;;  %v339_v51 = vmul.f32 %v975_v50, %v260_v56 }
  0xb9   : > { %v484_v13 = vadd.f32 %v452_v40, %v338_v44  ;;  %v485_v14 = vadd.f32 %v453_v43, %v339_v51 }
  0xba   : > { %v392_v59 = vpop.permute.xlu1 %391  ;;  %v270_v60 = vpop.permute.xlu0 %269 }
  0xbb   : > { %v456_v54 = vmul.f32 %v969_v47, %v392_v59  ;;  %v457_v3 = vmul.f32 %v971_v48, %v392_v59  ;;  %v342_v56 = vmul.f32 %v973_v49, %v270_v60  ;;  %v343_v6 = vmul.f32 %v975_v50, %v270_v60 }
  0xbe   : > { %v1033_v61 = vpop.permute.xlu1 %399  ;;  %v1035_v62 = vpop.permute.xlu0 %279 }
  0xbf   : > { %v460_v23 = vmul.f32 %v969_v47, %v1033_v61  ;;  %v461_v24 = vmul.f32 %v971_v48, %v1033_v61 }
  0xc2   : > { %v1037_v63 = vpop.permute.xlu1 %407  ;;  %v1039_v0 = vpop.permute.xlu0 %289 }
  0xc3   : > { %v465_v61 = vmul.f32 %v971_v48, %v1037_v63 }
  0xc6   : > { %v1045_v7 = vpop.permute.xlu1 %415  ;;  %v1047_v8 = vpop.permute.xlu0 %299 }
  0xc7   : > { %v468_v44 = vmul.f32 %v969_v47, %v1045_v7  ;;  %v469_v51 = vmul.f32 %v971_v48, %v1045_v7 }
  0xca   : > { %v528_v46 = vpop.permute.xlu0 %527 }
  0xcb   : > { %v602_v31 = vadd.f32 %v528_v46, %v474_v21  ;;  %v603_v32 = vadd.f32 %v528_v46, %v475_v22  ;;  %v523_v35 = vpop.permute.xlu1 %522  ;;  %v488_v21 = vadd.f32 %v456_v54, %v342_v56  ;;  %v489_v22 = vadd.f32 %v457_v3, %v343_v6 }
  0xcc   : > { %v600_v36 = vadd.f32 %v523_v35, %v472_v27  ;;  %v601_v37 = vadd.f32 %v523_v35, %v473_v28  ;;  %v346_v46 = vmul.f32 %v973_v49, %v1035_v62  ;;  %v347_v27 = vmul.f32 %v975_v50, %v1035_v62 }
  0xcd   : > { %634 = vst [vmem:[%s1065_s18 + $0x10] sm:$0xff] %v602_v31  ;;  %635 = vst [vmem:[%s1065_s18 + $0x18] sm:$0xff] %v603_v32  ;;  %v350_v62 = vmul.f32 %v973_v49, %v1039_v0  ;;  %v351_v31 = vmul.f32 %v975_v50, %v1039_v0 }
  0xce   : > { %632 = vst [vmem:[%s1065_s18] sm:$0xff] %v600_v36  ;;  %633 = vst [vmem:[%s1065_s18 + $0x8] sm:$0xff] %v601_v37  ;;  %v543_v45 = vpop.permute.xlu0 %542  ;;  %v492_v36 = vadd.f32 %v460_v23, %v346_v46  ;;  %v493_v37 = vadd.f32 %v461_v24, %v347_v27 }
  0xcf   : > { %v608_v55 = vadd.f32 %v543_v45, %v480_v38  ;;  %v609_v4 = vadd.f32 %v543_v45, %v481_v39  ;;  %v533_v5 = vpop.permute.xlu1 %532  ;;  %v354_v45 = vmul.f32 %v973_v49, %v1047_v8 }
  0xd0   : > { %v604_v11 = vadd.f32 %v533_v5, %v476_v52  ;;  %v605_v12 = vadd.f32 %v533_v5, %v477_v53  ;;  %v355_v52 = vmul.f32 %v975_v50, %v1047_v8 }
  0xd1   : > { %640 = vst [vmem:[%s1065_s18 + $0x40] sm:$0xff] %v608_v55  ;;  %641 = vst [vmem:[%s1065_s18 + $0x48] sm:$0xff] %v609_v4  ;;  %v500_v50 = vadd.f32 %v468_v44, %v354_v45 }
  0xd2   : > { %636 = vst [vmem:[%s1065_s18 + $0x20] sm:$0xff] %v604_v11  ;;  %637 = vst [vmem:[%s1065_s18 + $0x28] sm:$0xff] %v605_v12  ;;  %v553_v59 = vpop.permute.xlu0 %552  ;;  %v501_v7 = vadd.f32 %v469_v51, %v355_v52 }
  0xd3   : > { %v612_v15 = vadd.f32 %v553_v59, %v484_v13  ;;  %v613_v16 = vadd.f32 %v553_v59, %v485_v14  ;;  %v538_v19 = vpop.permute.xlu1 %537 }
  0xd4   : > { %v606_v20 = vadd.f32 %v538_v19, %v981_v57  ;;  %v607_v60 = vadd.f32 %v538_v19, %v983_v58  ;;  %v464_v58 = vmul.f32 %v969_v47, %v1037_v63 }
  0xd5   : > { %644 = vst [vmem:[%s1065_s18 + $0x60] sm:$0xff] %v612_v15  ;;  %645 = vst [vmem:[%s1065_s18 + $0x68] sm:$0xff] %v613_v16 }
  0xd6   : > { %638 = vst [vmem:[%s1065_s18 + $0x30] sm:$0xff] %v606_v20  ;;  %639 = vst [vmem:[%s1065_s18 + $0x38] sm:$0xff] %v607_v60  ;;  %v563_v57 = vpop.permute.xlu0 %562  ;;  %v496_v43 = vadd.f32 %v464_v58, %v350_v62 }
  0xd7   : > { %v616_v28 = vadd.f32 %v563_v57, %v488_v21  ;;  %v617_v29 = vadd.f32 %v563_v57, %v489_v22  ;;  %v548_v30 = vpop.permute.xlu1 %547 }
  0xd8   : > { %v610_v32 = vadd.f32 %v548_v30, %v989_v1  ;;  %v611_v35 = vadd.f32 %v548_v30, %v991_v2  ;;  %v497_v2 = vadd.f32 %v465_v61, %v351_v31 }
  0xd9   : > { %648 = vst [vmem:[%s1065_s18 + $0x80] sm:$0xff] %v616_v28  ;;  %649 = vst [vmem:[%s1065_s18 + $0x88] sm:$0xff] %v617_v29 }
  0xda   : > { %642 = vst [vmem:[%s1065_s18 + $0x50] sm:$0xff] %v610_v32  ;;  %643 = vst [vmem:[%s1065_s18 + $0x58] sm:$0xff] %v611_v35  ;;  %v573_v63 = vpop.permute.xlu0 %572 }
  0xdb   : > { %v620_v38 = vadd.f32 %v573_v63, %v492_v36  ;;  %v621_v39 = vadd.f32 %v573_v63, %v493_v37  ;;  %v558_v40 = vpop.permute.xlu1 %557 }
  0xdc   : > { %v614_v0 = vadd.f32 %v558_v40, %v997_v9  ;;  %v615_v1 = vadd.f32 %v558_v40, %v999_v10 }
  0xdd   : > { %652 = vst [vmem:[%s1065_s18 + $0xa0] sm:$0xff] %v620_v38  ;;  %653 = vst [vmem:[%s1065_s18 + $0xa8] sm:$0xff] %v621_v39 }
  0xde   : > { %646 = vst [vmem:[%s1065_s18 + $0x70] sm:$0xff] %v614_v0  ;;  %647 = vst [vmem:[%s1065_s18 + $0x78] sm:$0xff] %v615_v1  ;;  %v583_v9 = vpop.permute.xlu0 %582 }
  0xdf   : > { %v624_v10 = vadd.f32 %v583_v9, %v496_v43  ;;  %v625_v53 = vadd.f32 %v583_v9, %v497_v2  ;;  %v568_v47 = vpop.permute.xlu1 %567 }
  0xe0   : > { %v618_v48 = vadd.f32 %v568_v47, %v1005_v17  ;;  %v619_v49 = vadd.f32 %v568_v47, %v1007_v18 }
  0xe1   : > { %656 = vst [vmem:[%s1065_s18 + $0xc0] sm:$0xff] %v624_v10  ;;  %657 = vst [vmem:[%s1065_s18 + $0xc8] sm:$0xff] %v625_v53 }
  0xe2   : > { %650 = vst [vmem:[%s1065_s18 + $0x90] sm:$0xff] %v618_v48  ;;  %651 = vst [vmem:[%s1065_s18 + $0x98] sm:$0xff] %v619_v49  ;;  %v593_v8 = vpop.permute.xlu0 %592 }
  0xe3   : > { %v628_v54 = vadd.f32 %v593_v8, %v500_v50  ;;  %v629_v3 = vadd.f32 %v593_v8, %v501_v7  ;;  %v578_v55 = vpop.permute.xlu1 %577 }
  0xe4   : > { %v622_v17 = vadd.f32 %v578_v55, %v1013_v25  ;;  %v623_v4 = vadd.f32 %v578_v55, %v1015_v26 }
  0xe5   : > { %660 = vst [vmem:[%s1065_s18 + $0xe0] sm:$0xff] %v628_v54  ;;  %661 = vst [vmem:[%s1065_s18 + $0xe8] sm:$0xff] %v629_v3 }
  0xe6   : > { %654 = vst [vmem:[%s1065_s18 + $0xb0] sm:$0xff] %v622_v17  ;;  %655 = vst [vmem:[%s1065_s18 + $0xb8] sm:$0xff] %v623_v4 }
  0xe7   : > { %v588_v18 = vpop.permute.xlu1 %587 }
  0xe8   : > { %v626_v5 = vadd.f32 %v588_v18, %v1021_v33  ;;  %v627_v56 = vadd.f32 %v588_v18, %v1023_v34 }
  0xea   : > { %658 = vst [vmem:[%s1065_s18 + $0xd0] sm:$0xff] %v626_v5  ;;  %659 = vst [vmem:[%s1065_s18 + $0xd8] sm:$0xff] %v627_v56 }
  0xeb   : > { %v598_v6 = vpop.permute.xlu1 %597 }
  0xec   : > { %v630_v11 = vadd.f32 %v598_v6, %v1029_v41  ;;  %v631_v12 = vadd.f32 %v598_v6, %v1031_v42 }
  0xee   : > { %662 = vst [vmem:[%s1065_s18 + $0xf0] sm:$0xff] %v630_v11  ;;  %663 = vst [vmem:[%s1065_s18 + $0xf8] sm:$0xff] %v631_v12 }
  0xef PF: > { %s13_s14 = sadd.s32 1, %s817_s14   ;;  %s1162_s12 = smov %s813_s13 }
  0xf0   : > { %p10_p5 = scmp.ge.s32.totalorder %s13_s14, 4   ;;  %s1163_s13 = smov %s1165_s15 }
  0xf2   :  { %12 = sbr.rel (!%p10_p5) target bundleno = 2 (0x2), region = 62 }

</bundles_post_ra>
